<compile_context>
chip_gen: v7x
topology: tpu7x:2x2x1
jax: 0.10.0
libtpu: 0.0.40
codegen_flags: <defaults>
</compile_context>

<pallas_src>
import functools

import jax
import jax.numpy as jnp
from jax.experimental import pallas as pl
from jax.experimental.pallas import tpu as pltpu


def _round_up(x, m):
    return (x + m - 1) // m * m


# --------------------------------------------------------------------------
# Fused Pallas kernel: the whole MLP forward for one tile of node rows
# --------------------------------------------------------------------------
def _mlp_fused_kernel(ids_ref, npos_ref,
                      tbl2_ref, np1_w_ref, np1_b_ref, np2_w_ref, np2_b_ref,
                      lw_bot_ref, lb_ref,
                      o_ref, *, ntypes_padded):
    tv = ids_ref.shape[0]

    # ---- node-type path -------------------------------------------------
    # The entire node_encoder chain and the top half of the final hidden layer
    # were folded per node type into tbl2 (Tp, 2E) in the wrapper, so this is a
    # single one-hot lookup matmul (one MXU pass, K = Tp).
    ids = ids_ref[...]                                                      # (tv, 1) int32
    onehot = (ids == jax.lax.broadcasted_iota(
        jnp.int32, (tv, ntypes_padded), 1)).astype(jnp.bfloat16)            # (tv, Tp)
    nh_top = jnp.dot(onehot, tbl2_ref[...],
                     preferred_element_type=jnp.float32)                    # (tv, 2E) f32

    # ---- npos_encoder: Linear -> ReLU -> Linear -> ReLU ------------------
    # bf16 MXU operands, f32 accumulation; bias add + ReLU in f32.
    p = jnp.maximum(
        jnp.dot(npos_ref[...], np1_w_ref[...],
                preferred_element_type=jnp.float32) + np1_b_ref[...], 0.0)   # (tv, E)
    nposh = jnp.maximum(
        jnp.dot(p.astype(jnp.bfloat16), np2_w_ref[...],
                preferred_element_type=jnp.float32) + np2_b_ref[...], 0.0)   # (tv, E)

    # ---- final (only surviving) hidden layer ------------------------------
    # ReLU(nh @ W_top + nposh @ W_bot + b); nh @ W_top == nh_top (folded above).
    y = nh_top + jnp.dot(nposh.astype(jnp.bfloat16), lw_bot_ref[...],
                         preferred_element_type=jnp.float32) + lb_ref[...]
    o_ref[...] = jnp.maximum(y, 0.0).astype(o_ref.dtype)                     # lane-dense (2E = 128)


# --------------------------------------------------------------------------
# Wrapper
# --------------------------------------------------------------------------
def mlp_forward(params, nfeats, npos, *, num_ntypes, tile_v=1024,
                out_dtype=jnp.float32):
    """Matches MLP.forward: returns ([], nh)."""
    V = nfeats.shape[0]
    efeat_dim = npos.shape[1]
    E = params["ne_w"].shape[0]
    L = params["layer_w"].shape[0]
    # TODO(synk): num_layers == 1 (empty self.layers) would return the raw
    # node_encoder output; this fused kernel covers the num_layers >= 2 case.
    assert L >= 1

    # ---- wrapper-side constant folding (tiny one-time XLA ops) ------------
    # Only the LAST hidden layer's output survives the reference loop, so
    # layers 0..L-2 are dead work: neither computed nor DMA'd.
    lw_last = params["layer_w"][L - 1]                      # (2E, 2E)
    lb_last = params["layer_b"][L - 1]                      # (1, 2E)
    # node_encoder is a pure function of the node-type id:
    #   tbl  = ReLU(ReLU(emb) @ ne_w + ne_b)                (T, E)
    #   tbl2 = tbl @ W_top                                  (T, 2E)
    tbl = jnp.maximum(
        jnp.dot(jnp.maximum(params["emb_table"], 0.0), params["ne_w"])
        + params["ne_b"], 0.0)
    tbl2 = jnp.dot(tbl, lw_last[:E, :])                     # (T, 2E) f32
    Tp = _round_up(max(num_ntypes, 8), 8)                   # pad type axis to sublane multiple
    tbl2 = jnp.pad(tbl2, ((0, Tp - num_ntypes), (0, 0))).astype(jnp.bfloat16)

    lw_bot = lw_last[E:, :].astype(jnp.bfloat16)            # (E, 2E)
    np1_w = params["np1_w"].astype(jnp.bfloat16)
    np2_w = params["np2_w"].astype(jnp.bfloat16)
    npos_bf = npos.astype(jnp.bfloat16)

    # ---- row tiling: big tiles; pad V so arbitrary node counts run --------
    tv = min(tile_v, _round_up(V, 8))
    Vp = _round_up(V, tv)
    ids = nfeats.reshape(V, 1).astype(jnp.int32)            # (V, 1) type ids (squeeze folded in)
    if Vp != V:
        ids = jnp.pad(ids, ((0, Vp - V), (0, 0)))           # padded rows -> type 0, zero npos
        npos_bf = jnp.pad(npos_bf, ((0, Vp - V), (0, 0)))

    kernel = functools.partial(_mlp_fused_kernel, ntypes_padded=Tp)

    nh = pl.pallas_call(
        kernel,
        out_shape=jax.ShapeDtypeStruct((Vp, 2 * E), out_dtype),
        grid=(Vp // tv,),
        in_specs=[
            pl.BlockSpec((tv, 1), lambda i: (i, 0)),               # node type ids
            pl.BlockSpec((tv, efeat_dim), lambda i: (i, 0)),       # npos (bf16)
            pl.BlockSpec((Tp, 2 * E), lambda i: (0, 0)),           # folded node-type table (bf16)
            pl.BlockSpec((efeat_dim, E), lambda i: (0, 0)),        # npos_encoder Linear1 W (bf16)
            pl.BlockSpec((1, E), lambda i: (0, 0)),                # npos_encoder Linear1 b (f32)
            pl.BlockSpec((E, E), lambda i: (0, 0)),                # npos_encoder Linear2 W (bf16)
            pl.BlockSpec((1, E), lambda i: (0, 0)),                # npos_encoder Linear2 b (f32)
            pl.BlockSpec((E, 2 * E), lambda i: (0, 0)),            # last layer W bottom half (bf16)
            pl.BlockSpec((1, 2 * E), lambda i: (0, 0)),            # last layer bias (f32)
        ],
        out_specs=pl.BlockSpec((tv, 2 * E), lambda i: (i, 0)),
        compiler_params=pltpu.CompilerParams(
            dimension_semantics=("parallel",)),
    )(ids, npos_bf, tbl2, np1_w, params["np1_b"],
      np2_w, params["np2_b"], lw_bot, lb_last)

    if Vp != V:
        nh = nh[:V]
    return ([], nh)


# --------------------------------------------------------------------------
# Pure-JAX reference (f32), faithful to the PyTorch forward
# --------------------------------------------------------------------------
def _reference_forward(params, nfeats, npos):
    ids = nfeats.reshape(-1)
    e = jnp.maximum(params["emb_table"][ids], 0.0)
    nh = jnp.maximum(e @ params["ne_w"] + params["ne_b"], 0.0)
    p = jnp.maximum(npos @ params["np1_w"] + params["np1_b"], 0.0)
    nposh = jnp.maximum(p @ params["np2_w"] + params["np2_b"], 0.0)
    feat = jnp.concatenate([nh, nposh], axis=-1)
    out = nh
    for l in range(params["layer_w"].shape[0]):          # every layer sees feat; last wins
        out = jnp.maximum(feat @ params["layer_w"][l] + params["layer_b"][l], 0.0)
    return ([], out)


# --------------------------------------------------------------------------
# Parameter init (deterministic, synthetic)
# --------------------------------------------------------------------------
def init_params(key, num_layers, num_ntypes, emb_dim, efeat_dim, out_dim):
    ks = iter(jax.random.split(key, 16))

    def w(shape, scale=0.1):
        return (scale * jax.random.normal(next(ks), shape)).astype(jnp.float32)

    E = emb_dim
    L = num_layers - 1
    p = {
        # node_encoder: Embedding(num_ntypes, E) -> ReLU -> Linear(E, E) -> ReLU
        "emb_table": w((num_ntypes, E)),
        "ne_w": w((E, E)), "ne_b": w((1, E)),
        # npos_encoder: Linear(efeat_dim, E) -> ReLU -> Linear(E, E) -> ReLU
        "np1_w": w((efeat_dim, E)), "np1_b": w((1, E)),
        "np2_w": w((E, E)), "np2_b": w((1, E)),
        # hidden layers (intended semantics: Linear(2E, 2E) + ReLU, applied to feat)
        # TODO(synk): the reference constructor is invalid PyTorch
        # (nn.Sequential(2*emb_dim, 2*emb_dim) / two-arg ModuleList.append); we implement
        # the evident intent of Linear(2E, 2E) + ReLU per hidden layer.
        "layer_w": w((L, 2 * E, 2 * E)), "layer_b": w((L, 1, 2 * E)),
        # TODO(synk): self.decoder and self.drop_out are defined in __init__ but never
        # invoked in forward -> intentionally omitted (no-ops for the forward pass).
    }
    return p


# --------------------------------------------------------------------------
if __name__ == "__main__":
    key = jax.random.PRNGKey(0)

    # small, forward-consistent shapes
    V = 16                 # nodes
    num_ntypes = 4
    emb_dim = 64           # 2*emb_dim = 128 -> lane-dense kernel output
    efeat_dim = 16
    out_dim = 8            # decoder out_dim (decoder unused in forward)
    num_layers = 3         # -> 2 hidden Linear(2E, 2E) + ReLU layers (only last survives)

    k_p, k_n, k_e = jax.random.split(key, 3)
    params = init_params(k_p, num_layers, num_ntypes, emb_dim, efeat_dim, out_dim)

    nfeats = jax.random.randint(k_n, (V, 1), 0, num_ntypes, dtype=jnp.int32)  # node type ids
    npos = jax.random.normal(k_e, (V, efeat_dim), dtype=jnp.float32)          # node pos feats

    fwd = jax.jit(functools.partial(mlp_forward, num_ntypes=num_ntypes))
    _, nh = fwd(params, nfeats, npos)
    nh = jax.block_until_ready(nh)

    assert nh.shape == (V, 2 * emb_dim) and nh.dtype == jnp.float32
    assert bool(jnp.all(jnp.isfinite(nh)))

    # numerical check vs f32 reference (kernel matmuls run bf16 -> loose tol)
    _, nh_ref = _reference_forward(params, nfeats, npos)
    assert bool(jnp.allclose(nh, nh_ref, rtol=3e-2, atol=3e-2)), "mismatch vs reference"

    print("KERNEL_OK")
</pallas_src>

<mosaic_0001>
module attributes {stable_mosaic.version = 11 : i64} {
  func.func @_mlp_fused_kernel(%arg0: i32, %arg1: memref<16x1xi32, #tpu.memory_space<vmem>>, %arg2: memref<16x16xbf16, #tpu.memory_space<vmem>>, %arg3: memref<8x128xbf16, #tpu.memory_space<vmem>>, %arg4: memref<16x64xbf16, #tpu.memory_space<vmem>>, %arg5: memref<1x64xf32, #tpu.memory_space<vmem>>, %arg6: memref<64x64xbf16, #tpu.memory_space<vmem>>, %arg7: memref<1x64xf32, #tpu.memory_space<vmem>>, %arg8: memref<64x128xbf16, #tpu.memory_space<vmem>>, %arg9: memref<1x128xf32, #tpu.memory_space<vmem>>, %arg10: memref<16x128xf32, #tpu.memory_space<vmem>>) attributes {dimension_semantics = [#tpu.dimension_semantics<parallel>], iteration_bounds = array<i64: 1>, scalar_prefetch = 0 : i64, scratch_operands = 0 : i64, tpu.core_type = #tpu.core_type<tc>, window_params = [{transform_indices = @transform_0, window_bounds = array<i64: 16, 1>}, {transform_indices = @transform_1, window_bounds = array<i64: 16, 16>}, {pipeline_mode = #tpu.pipeline_mode<synchronous>, transform_indices = @transform_2, window_bounds = array<i64: 8, 128>}, {pipeline_mode = #tpu.pipeline_mode<synchronous>, transform_indices = @transform_3, window_bounds = array<i64: 16, 64>}, {pipeline_mode = #tpu.pipeline_mode<synchronous>, transform_indices = @transform_4, window_bounds = array<i64: 1, 64>}, {pipeline_mode = #tpu.pipeline_mode<synchronous>, transform_indices = @transform_5, window_bounds = array<i64: 64, 64>}, {pipeline_mode = #tpu.pipeline_mode<synchronous>, transform_indices = @transform_6, window_bounds = array<i64: 1, 64>}, {pipeline_mode = #tpu.pipeline_mode<synchronous>, transform_indices = @transform_7, window_bounds = array<i64: 64, 128>}, {pipeline_mode = #tpu.pipeline_mode<synchronous>, transform_indices = @transform_8, window_bounds = array<i64: 1, 128>}, {transform_indices = @transform_9, window_bounds = array<i64: 16, 128>}]} {
    %c0 = arith.constant 0 : index
    %c0_0 = arith.constant 0 : index
    %0 = vector.load %arg1[%c0, %c0_0] : memref<16x1xi32, #tpu.memory_space<vmem>>, vector<16x1xi32>
    %1 = tpu.iota {dimensions = array<i32: 1>} : vector<16x8xi32>
    %2 = vector.broadcast %0 : vector<16x1xi32> to vector<16x8xi32>
    %3 = arith.cmpi eq, %2, %1 : vector<16x8xi32>
    %4 = arith.extui %3 : vector<16x8xi1> to vector<16x8xi32>
    %5 = arith.sitofp %4 : vector<16x8xi32> to vector<16x8xf32>
    %6 = arith.truncf %5 : vector<16x8xf32> to vector<16x8xbf16>
    %c0_1 = arith.constant 0 : index
    %c0_2 = arith.constant 0 : index
    %7 = vector.load %arg3[%c0_1, %c0_2] : memref<8x128xbf16, #tpu.memory_space<vmem>>, vector<8x128xbf16>
    %cst = arith.constant dense<0.000000e+00> : vector<16x128xf32>
    %8 = tpu.matmul %6, %7, %cst {dimension_numbers = #tpu.dot_dimension_numbers<[1], [0], [0], [1], [0, 0, 1, 1], [], []>} : vector<16x8xbf16>, vector<8x128xbf16>, vector<16x128xf32> -> vector<16x128xf32>
    %c0_3 = arith.constant 0 : index
    %c0_4 = arith.constant 0 : index
    %9 = vector.load %arg2[%c0_3, %c0_4] : memref<16x16xbf16, #tpu.memory_space<vmem>>, vector<16x16xbf16>
    %c0_5 = arith.constant 0 : index
    %c0_6 = arith.constant 0 : index
    %10 = vector.load %arg4[%c0_5, %c0_6] : memref<16x64xbf16, #tpu.memory_space<vmem>>, vector<16x64xbf16>
    %cst_7 = arith.constant dense<0.000000e+00> : vector<16x64xf32>
    %11 = tpu.matmul %9, %10, %cst_7 {dimension_numbers = #tpu.dot_dimension_numbers<[1], [0], [0], [1], [0, 0, 1, 1], [], []>} : vector<16x16xbf16>, vector<16x64xbf16>, vector<16x64xf32> -> vector<16x64xf32>
    %c0_8 = arith.constant 0 : index
    %c0_9 = arith.constant 0 : index
    %12 = vector.load %arg5[%c0_8, %c0_9] : memref<1x64xf32, #tpu.memory_space<vmem>>, vector<1x64xf32>
    %13 = vector.broadcast %12 : vector<1x64xf32> to vector<16x64xf32>
    %14 = arith.addf %11, %13 : vector<16x64xf32>
    %cst_10 = arith.constant 0.000000e+00 : f32
    %15 = vector.broadcast %cst_10 : f32 to vector<16x64xf32>
    %16 = arith.maximumf %14, %15 : vector<16x64xf32>
    %17 = arith.truncf %16 : vector<16x64xf32> to vector<16x64xbf16>
    %c0_11 = arith.constant 0 : index
    %c0_12 = arith.constant 0 : index
    %18 = vector.load %arg6[%c0_11, %c0_12] : memref<64x64xbf16, #tpu.memory_space<vmem>>, vector<64x64xbf16>
    %cst_13 = arith.constant dense<0.000000e+00> : vector<16x64xf32>
    %19 = tpu.matmul %17, %18, %cst_13 {dimension_numbers = #tpu.dot_dimension_numbers<[1], [0], [0], [1], [0, 0, 1, 1], [], []>} : vector<16x64xbf16>, vector<64x64xbf16>, vector<16x64xf32> -> vector<16x64xf32>
    %c0_14 = arith.constant 0 : index
    %c0_15 = arith.constant 0 : index
    %20 = vector.load %arg7[%c0_14, %c0_15] : memref<1x64xf32, #tpu.memory_space<vmem>>, vector<1x64xf32>
    %21 = vector.broadcast %20 : vector<1x64xf32> to vector<16x64xf32>
    %22 = arith.addf %19, %21 : vector<16x64xf32>
    %cst_16 = arith.constant 0.000000e+00 : f32
    %23 = vector.broadcast %cst_16 : f32 to vector<16x64xf32>
    %24 = arith.maximumf %22, %23 : vector<16x64xf32>
    %25 = arith.truncf %24 : vector<16x64xf32> to vector<16x64xbf16>
    %c0_17 = arith.constant 0 : index
    %c0_18 = arith.constant 0 : index
    %26 = vector.load %arg8[%c0_17, %c0_18] : memref<64x128xbf16, #tpu.memory_space<vmem>>, vector<64x128xbf16>
    %cst_19 = arith.constant dense<0.000000e+00> : vector<16x128xf32>
    %27 = tpu.matmul %25, %26, %cst_19 {dimension_numbers = #tpu.dot_dimension_numbers<[1], [0], [0], [1], [0, 0, 1, 1], [], []>} : vector<16x64xbf16>, vector<64x128xbf16>, vector<16x128xf32> -> vector<16x128xf32>
    %28 = arith.addf %8, %27 : vector<16x128xf32>
    %c0_20 = arith.constant 0 : index
    %c0_21 = arith.constant 0 : index
    %29 = vector.load %arg9[%c0_20, %c0_21] : memref<1x128xf32, #tpu.memory_space<vmem>>, vector<1x128xf32>
    %30 = vector.broadcast %29 : vector<1x128xf32> to vector<16x128xf32>
    %31 = arith.addf %28, %30 : vector<16x128xf32>
    %cst_22 = arith.constant 0.000000e+00 : f32
    %32 = vector.broadcast %cst_22 : f32 to vector<16x128xf32>
    %33 = arith.maximumf %31, %32 : vector<16x128xf32>
    %c0_23 = arith.constant 0 : index
    %c0_24 = arith.constant 0 : index
    %34 = vector.load %arg10[%c0_23, %c0_24] : memref<16x128xf32, #tpu.memory_space<vmem>>, vector<16x128xf32>
    tpu.vector_store %arg10[%c0_23, %c0_24], %33 {strides = array<i32>} : memref<16x128xf32, #tpu.memory_space<vmem>>, vector<16x128xf32>,
    return
  }
  func.func @transform_0(%arg0: i32) -> (i32, i32) {
    %c0_i32 = arith.constant 0 : i32
    %c0_i32_0 = arith.constant 0 : i32
    return %arg0, %c0_i32 : i32, i32
  }
  func.func @transform_1(%arg0: i32) -> (i32, i32) {
    %c0_i32 = arith.constant 0 : i32
    %c0_i32_0 = arith.constant 0 : i32
    return %arg0, %c0_i32 : i32, i32
  }
  func.func @transform_2(%arg0: i32) -> (i32, i32) {
    %c0_i32 = arith.constant 0 : i32
    %c0_i32_0 = arith.constant 0 : i32
    %c0_i32_1 = arith.constant 0 : i32
    return %c0_i32, %c0_i32_0 : i32, i32
  }
  func.func @transform_3(%arg0: i32) -> (i32, i32) {
    %c0_i32 = arith.constant 0 : i32
    %c0_i32_0 = arith.constant 0 : i32
    %c0_i32_1 = arith.constant 0 : i32
    return %c0_i32, %c0_i32_0 : i32, i32
  }
  func.func @transform_4(%arg0: i32) -> (i32, i32) {
    %c0_i32 = arith.constant 0 : i32
    %c0_i32_0 = arith.constant 0 : i32
    %c0_i32_1 = arith.constant 0 : i32
    return %c0_i32, %c0_i32_0 : i32, i32
  }
  func.func @transform_5(%arg0: i32) -> (i32, i32) {
    %c0_i32 = arith.constant 0 : i32
    %c0_i32_0 = arith.constant 0 : i32
    %c0_i32_1 = arith.constant 0 : i32
    return %c0_i32, %c0_i32_0 : i32, i32
  }
  func.func @transform_6(%arg0: i32) -> (i32, i32) {
    %c0_i32 = arith.constant 0 : i32
    %c0_i32_0 = arith.constant 0 : i32
    %c0_i32_1 = arith.constant 0 : i32
    return %c0_i32, %c0_i32_0 : i32, i32
  }
  func.func @transform_7(%arg0: i32) -> (i32, i32) {
    %c0_i32 = arith.constant 0 : i32
    %c0_i32_0 = arith.constant 0 : i32
    %c0_i32_1 = arith.constant 0 : i32
    return %c0_i32, %c0_i32_0 : i32, i32
  }
  func.func @transform_8(%arg0: i32) -> (i32, i32) {
    %c0_i32 = arith.constant 0 : i32
    %c0_i32_0 = arith.constant 0 : i32
    %c0_i32_1 = arith.constant 0 : i32
    return %c0_i32, %c0_i32_0 : i32, i32
  }
  func.func @transform_9(%arg0: i32) -> (i32, i32) {
    %c0_i32 = arith.constant 0 : i32
    %c0_i32_0 = arith.constant 0 : i32
    return %arg0, %c0_i32 : i32, i32
  }
}

</mosaic_0001>

<bundles_post_ra>
// kernel: mlp_forward.1
= control target key start
LH: loop header
LB: loop body
LE: loop exit
PB: predicated region body
PF: predicated region fallthrough
CT: control target
= control target key end

     0   :  { %v473_v1 = vmov 0.0   ;;  %vm474_vm0 = vmmov 0   ;;  %vm74_vm1 = vcmask 130048   ;;  %s611_s0 = inlined_call_operand.vmem [shape: s32[16,1], index: 0, kind: input, shape index: {}]   ;;  %s612_s1 = inlined_call_operand.vmem [shape: bf16[16,16], index: 1, kind: input, shape index: {}]   ;;  %s613_s2 = inlined_call_operand.vmem [shape: bf16[8,128], index: 2, kind: input, shape index: {}]   ;;  %s614_s3 = inlined_call_operand.vmem [shape: bf16[16,64], index: 3, kind: input, shape index: {}]   ;;  %s615_s4 = inlined_call_operand.vmem [shape: f32[1,64], index: 4, kind: input, shape index: {}]   ;;  %s616_s5 = inlined_call_operand.vmem [shape: bf16[64,64], index: 5, kind: input, shape index: {}]   ;;  %s617_s6 = inlined_call_operand.vmem [shape: f32[1,64], index: 6, kind: input, shape index: {}]   ;;  %s618_s7 = inlined_call_operand.vmem [shape: bf16[64,128], index: 7, kind: input, shape index: {}]   ;;  %s619_s8 = inlined_call_operand.vmem [shape: f32[1,128], index: 8, kind: input, shape index: {}]   ;;  %s620_s9 = inlined_call_operand.hbm [shape: f32[16,128], index: 9, kind: output, shape index: {}]  }
   0x1   :  { %v439_v0 = vld [vmem:[%s614_s3] sm:$0xff]   ;;  %396 = vmatprep.subr.bf16.mxu0 %v473_v1  ;;  %402 = vmatprep.subr.bf16.mxu1 %v473_v1  ;;  %v442_v4 = vld [vmem:[%s616_s5 + $0x8] sm:$0xff]  }
   0x2   :  { %v440_v2 = vld [vmem:[%s612_s1] sm:$0xff]   ;;  %397 = vmatpush3.bf16.msra.mxu0 %v439_v0  ;;  %398 = vmatprep.mubr.msk.bf16.mxu0 %vm474_vm0, %v473_v1 }
   0x3   :  { %v441_v3 = vld [vmem:[%s616_s5] sm:$0xff]   ;;  %410 = vmatprep.mubr.msk.bf16.mxu1 %vm474_vm0, %v473_v1  ;;  %414 = vmatprep.subr.bf16.mxu0 %v473_v1 }
   0x4   :  { %403 = vmatpush3.bf16.msra.mxu1 %v441_v3 }
   0x5   :  { %399 = vmatmul.mubr.msk.bf16.vlgmr.msra.gmra.mrb[0].mxu0 %vm74_vm1, %v440_v2  ;;  %404 = vmatprep.subr.bf16.mxu1 %v473_v1 }
   0x6   :  { %422 = vmatprep.mubr.msk.bf16.mxu0 %vm474_vm0, %v473_v1 }
   0x8   :  { %405 = vmatpush3.bf16.msra.mxu1 %v442_v4 }
   0x9   :  { %14 = vsyncpa [#allocation3], 0  ;;  %406 = vmatprep.subr.bf16.mxu1 %v473_v1  ;;  %v443_v5 = vld [vmem:[%s616_s5 + $0x10] sm:$0xff]   ;;  %v444_v6 = vld [vmem:[%s616_s5 + $0x18] sm:$0xff]   ;;  %v475_v8 = vmov 0   ;;  %vm289_vm2 = vcmask 1043456   ;;  %v36_v25 = vlaneseq }
   0xa   :  { %v34_v7 = vld [vmem:[%s611_s0] sm:$0xff]  ;;  %438 = vset.pattern.permute.xlu0 %v475_v8  ;;  %v35_v9 = vld [vmem:[%s611_s0 + $0x8] sm:$0xff]  ;;  %vm161_vm3 = vcmask 523264   ;;  %v447_v31 = vld [vmem:[%s618_s7 + $0x10] sm:$0xff]   ;;  %vm285_vm6 = vcmask 64512  }
   0xb   :  { %39 = vperm.xlu0 %438, %v34_v7   ;;  %v445_v10 = vld [vmem:[%s618_s7] sm:$0xff]   ;;  %v446_v11 = vld [vmem:[%s618_s7 + $0x8] sm:$0xff]   ;;  %v37_v26 = vand.u32 127, %v36_v25  ;;  %v448_v32 = vld [vmem:[%s618_s7 + $0x18] sm:$0xff]  }
   0xc   :  { %407 = vmatpush3.bf16.msra.mxu1 %v443_v5  ;;  %415 = vmatpush3.bf16.msra.mxu0 %v445_v10  ;;  %v365_v12 = vld [vmem:[%s615_s4] ss:$0 sm:$0xff] }
   0xd   :  { %408 = vmatprep.subr.bf16.mxu1 %v473_v1  ;;  %416 = vmatprep.subr.bf16.mxu0 %v473_v1  ;;  %v51_v19 = vld [vmem:[%s613_s2] sm:$0xf] }
   0xe   :  { %v291_v23 = vsel %vm289_vm2, %v51_v19, 0  ;;  %v369_v33 = vld [vmem:[%s617_s6] ss:$0 sm:$0xff]  ;;  %s476_s6 = smov [#allocation2]  }
   0xf   :  { %42 = vperm.xlu0 %438, %v35_v9   ;;  %v381_v48 = vld [vmem:[%s619_s8] ss:$0 sm:$0xff]  ;;  %s352_s13 = sshll.u32 %s476_s6, 4  ;;  %s353_s13 = int_to_ptr.vmem [resolvable:$true] %s352_s13 }
  0x10   :  { %409 = vmatpush3.bf16.msra.mxu1 %v444_v6  ;;  %417 = vmatpush3.bf16.msra.mxu0 %v446_v11  ;;  %s449_s14 = scalar_lea.vmem %s353_s13, 256  ;;  %p454_p1 = scmp.lt.s32.totalorder %s353_s13, %s353_s13 }
  0x11   :  { %426 = vmatprep.subr.bf16.mxu1 %v473_v1  ;;  %418 = vmatprep.subr.bf16.mxu0 %v473_v1  ;;  %p450_p0 = scmp.ne.s32.totalorder %s353_s13, %s449_s14  ;;  %p455_p2 = scmp.lt.s32.totalorder %s449_s14, %s449_s14 }
  0x13   :  { %p456_p3 = por %p455_p2, %p454_p1 }
  0x14   :  { %419 = vmatpush3.bf16.msra.mxu0 %v447_v31 }
  0x15   :  { %420 = vmatprep.subr.bf16.mxu0 %v473_v1  ;;  %p457_p4 = pnand %p456_p3, %p450_p0 }
  0x18   :  { %421 = vmatpush3.bf16.msra.mxu0 %v448_v32 }
  0x8a   :  { %v40_v24 = vpop.permute.xlu0 %39 }
  0x8b   :  { %vm44_vm4 = vcmp.eq.s32.totalorder %v40_v24, %v37_v26 }
  0x8c   :  { %v363_v28 = vsel %vm44_vm4, 1.0, %v473_v1 }
  0x8e   :  { %v43_v27 = vpop.permute.xlu0 %42 }
  0x8f   :  { %vm45_vm5 = vcmp.eq.s32.totalorder %v43_v27, %v37_v26 }
  0x90   :  { %v364_v29 = vsel %vm45_vm5, 1.0, %v473_v1 }
  0x91   :  { %v50_v30 = vpack.c.bf16 %v364_v29, %v363_v28 }
  0xd8   :  { %v112_v13 = vpop.f32.mrb[0].mxu0 }
  0xd9   :  { %v113_v14 = vadd.f32 %v365_v12, %v112_v13  ;;  %v400_v15 = vpop.f32.mrb[1].mxu0 }
  0xda   :  { %v115_v16 = vpop.f32.mrb[2].mxu0 }
  0xdb   :  { %v116_v17 = vadd.f32 %v365_v12, %v115_v16  ;;  %v401_v18 = vpop.f32.mrb[3].mxu0  ;;  %v119_v20 = vmax.f32 %v113_v14, 0.0 }
  0xdd   :  { %v120_v21 = vmax.f32 %v116_v17, 0.0 }
  0xdf   :  { %v121_v22 = vpack.c.bf16 %v120_v21, %v119_v20 }
  0xe1   :  { %411 = vmatmul.mubr.msk.bf16.vlgmr.msra.gmra.mrb[0].mxu1 %vm161_vm3, %v121_v22 }
  0xe2   :  { %427 = vmatpush3.bf16.msra.mxu1 %v291_v23  ;;  %428 = vmatprep.mubr.msk.bf16.mxu1 %vm474_vm0, %v473_v1 }
  0xe9   :  { %429 = vmatmul.mubr.msk.bf16.vlgmr.msra.gmra.mrb[4].mxu1 %vm285_vm6, %v50_v30 }
 0x1b4   :  { %v199_v34 = vpop.f32.mrb[0].mxu1 }
 0x1b5   :  { %v200_v35 = vadd.f32 %v369_v33, %v199_v34  ;;  %v412_v36 = vpop.f32.mrb[1].mxu1 }
 0x1b6   :  { %v202_v37 = vpop.f32.mrb[2].mxu1 }
 0x1b7   :  { %v203_v38 = vadd.f32 %v369_v33, %v202_v37  ;;  %v413_v39 = vpop.f32.mrb[3].mxu1  ;;  %v206_v40 = vmax.f32 %v200_v35, 0.0 }
 0x1b9   :  { %v207_v41 = vmax.f32 %v203_v38, 0.0 }
 0x1bb   :  { %v208_v42 = vpack.c.bf16 %v207_v41, %v206_v40 }
 0x1bc   :  { %v327_v43 = vpop.f32.mrb[4].mxu1 }
 0x1bd   :  { %423 = vmatmul.mubr.msk.bf16.vlgmr.msra.gmra.mrb[4].mxu0 %vm161_vm3, %v208_v42  ;;  %v430_v44 = vpop.f32.mrb[5].mxu1 }
 0x1be   :  { %v330_v45 = vpop.f32.mrb[6].mxu1 }
 0x1bf   :  { %v431_v46 = vpop.f32.mrb[7].mxu1 }
 0x290   :  { %v278_v47 = vpop.f32.mrb[4].mxu0 }
 0x291   :  { %v328_v49 = vadd.f32 %v327_v43, %v278_v47  ;;  %v424_v50 = vpop.f32.mrb[5].mxu0 }
 0x292   :  { %v281_v51 = vpop.f32.mrb[6].mxu0 }
 0x293   :  { %v341_v52 = vadd.f32 %v381_v48, %v328_v49  ;;  %v331_v53 = vadd.f32 %v330_v45, %v281_v51  ;;  %v425_v54 = vpop.f32.mrb[7].mxu0 }
 0x295   :  { %v343_v55 = vmax.f32 %v341_v52, 0.0  ;;  %v342_v56 = vadd.f32 %v381_v48, %v331_v53 }
 0x297   :  { %345 = vst [vmem:[#allocation2] sm:$0xff] %v343_v55  ;;  %v344_v57 = vmax.f32 %v342_v56, 0.0 }
 0x299   :  { %346 = vst [vmem:[#allocation2 + $0x8] sm:$0xff] %v344_v57 }
 0x29a   :  { %460 = shalt.err (!%p457_p4)
}
 0x29b   :  { %s461_s1 = scalar_lea.hbm %s620_s9, 256 }
 0x29c   :  { %p462_p5 = scmp.ne.s32.totalorder %s620_s9, %s461_s1  ;;  %p465_p6 = scmp.lt.u32.totalorder %s461_s1, %s620_s9 }
 0x29e   :  { %p467_p7 = pnand %p465_p6, %p462_p5 }
 0x2a0   :  { %470 = shalt.err (!%p467_p7)
}
 0x2a1   :  { %s477_s19 = smov 128   ;;  %s478_s20 = smov 8  }
 0x2a2   :  { %358 = dma.vmem_to_hbm [thread:$0]  %s353_s13, 256, %s620_s9, [#allocation3], %s477_s19, %s477_s19, %s478_s20  }
 0x2a3   :  { %471 = dma.done.wait [#allocation3], 256  }
 0x2a4   :  { %472 = vsyncadd [#allocation3], 4294967040 }
 0x2a5   :  { %362 = vsyncpa [#allocation3], 1 }

</bundles_post_ra>
